<compile_context>
chip_gen: v7x
topology: tpu7x:2x2x1
jax: 0.10.0
libtpu: 0.0.40
codegen_flags: <defaults>
</compile_context>

<pallas_src>
import functools

import jax
import jax.numpy as jnp
from jax import lax
from jax.experimental import pallas as pl
from jax.experimental.pallas import tpu as pltpu


def _round_up(x, m):
    return (x + m - 1) // m * m


def _num_tensorcores():
    # v7x has 2 TensorCores per chip; v5e/v6e have 1.  Best-effort detection;
    # correctness never depends on this (it only shapes the batch tiling).
    try:
        kind = jax.devices()[0].device_kind
    except Exception:
        return 1
    return 2 if "7" in str(kind) else 1


def _ffnet5_kernel(x_ref, w_ref, b_ref, o_ref, *, n_layers, h_pad, in_dim):
    # x_ref: (bt, in_dim)             f32  -- natural batch-major layout
    # w_ref: (n_layers*h_pad, h_pad)  bf16 -- layer l = rows [l*h_pad,(l+1)*h_pad)
    # b_ref: (n_layers*h_pad, 1)      f32
    # o_ref: (1, bt)                  f32  -- lane-dense output block
    x_bf = x_ref[...].astype(jnp.bfloat16)  # f32 -> bf16 cast in-kernel (VPU)

    # Layer 0: z = W0 @ x^T, expressed as a trans-B contraction so the batch
    # lands on the 128-lane axis without an explicit transpose of x.
    w0 = w_ref[0:h_pad, :] if in_dim == h_pad else w_ref[0:h_pad, 0:in_dim]
    z = lax.dot_general(w0, x_bf, (((1,), (1,)), ((), ())),
                        preferred_element_type=jnp.float32)          # (h_pad, bt)
    z = z + b_ref[0:h_pad, :]
    act = jnp.maximum(z.astype(jnp.bfloat16), 0)                     # bf16 ReLU

    # Hidden layers 1 .. n_layers-2: (h_pad,h_pad) @ (h_pad,bt) on the MXU.
    for l in range(1, n_layers - 1):
        w_l = w_ref[l * h_pad:(l + 1) * h_pad, :]
        z = jnp.dot(w_l, act, preferred_element_type=jnp.float32)
        z = z + b_ref[l * h_pad:(l + 1) * h_pad, :]
        act = jnp.maximum(z.astype(jnp.bfloat16), 0)

    # Final layer: real out_features == 1, so only one sublane group (8 rows)
    # of the zero-padded slab is pushed through the MXU; row 0 is the output.
    lo = (n_layers - 1) * h_pad
    w_last = w_ref[lo:lo + 8, :]                                      # (8, h_pad)
    z = jnp.dot(w_last, act, preferred_element_type=jnp.float32)      # (8, bt)
    z0 = z[0:1, :] + b_ref[lo:lo + 1, :]                              # (1, bt)
    o_ref[...] = jax.nn.sigmoid(z0).astype(o_ref.dtype)


def ffnet5_forward(x, params, *, max_batch_tile=8192, param_dtype=jnp.bfloat16):
    """x: (B, input_size) f32.

    params: list of (W, b) in PyTorch nn.Linear layout:
        W = (out_features, in_features), b = (out_features,).
    Returns (B, 1) f32, matching FFNet5Hidden.forward.
    """
    B, in_dim = x.shape
    n_layers = len(params)

    # Common layer width, padded to a multiple of 16 (bf16 sublane packing).
    dims = [in_dim] + [w.shape[0] for (w, _) in params]
    h_pad = _round_up(max(max(dims), 16), 16)

    # Batch tile: as large as possible to amortize the ~0.35us per-step
    # overhead.  One step on single-TC chips, two parallel steps on v7x,
    # and 8192-wide streaming tiles for very large batches.
    n_tc = _num_tensorcores()
    bt = min(_round_up(max_batch_tile, 128),
             max(128, _round_up(-(-B // n_tc), 128)))
    B_pad = _round_up(max(B, 1), bt)

    # Pack weights/biases into single zero-padded slabs.  Padded rows get zero
    # weights and zero bias -> pre-activation 0 -> relu(0) = 0, and padded
    # input columns multiply those zeros, so the math is exact.
    w_slab = jnp.zeros((n_layers * h_pad, h_pad), param_dtype)
    b_slab = jnp.zeros((n_layers * h_pad, 1), jnp.float32)
    for l, (w, b) in enumerate(params):
        out_d, in_d = w.shape
        w_slab = w_slab.at[l * h_pad:l * h_pad + out_d, :in_d].set(
            w.astype(param_dtype))
        b_slab = b_slab.at[l * h_pad:l * h_pad + out_d, 0].set(
            b.astype(jnp.float32))

    # x stays in its natural layout (no transpose / dtype round trip through
    # HBM); only pad the batch dim when the tile does not divide it.
    if B_pad != B:
        x = jnp.pad(x, ((0, B_pad - B), (0, 0)))

    kernel = functools.partial(_ffnet5_kernel, n_layers=n_layers,
                               h_pad=h_pad, in_dim=in_dim)

    outT = pl.pallas_call(
        kernel,
        out_shape=jax.ShapeDtypeStruct((1, B_pad), jnp.float32),
        grid_spec=pltpu.PrefetchScalarGridSpec(
            num_scalar_prefetch=0,
            grid=(B_pad // bt,),
            in_specs=[
                pl.BlockSpec((bt, in_dim), lambda i: (i, 0)),               # x tile
                pl.BlockSpec((n_layers * h_pad, h_pad), lambda i: (0, 0)),  # weights
                pl.BlockSpec((n_layers * h_pad, 1), lambda i: (0, 0)),      # biases
            ],
            out_specs=pl.BlockSpec((1, bt), lambda i: (0, i)),
        ),
        compiler_params=pltpu.CompilerParams(
            dimension_semantics=("parallel",),
        ),
    )(x, w_slab, b_slab)

    return outT[0, :B].reshape(B, 1)


def init_params(key, input_size, hidden_layers_sizes):
    """Deterministic init mimicking nn.Linear's uniform(-1/sqrt(fan_in), +).

    Weights are stored in PyTorch layout: W = (out_features, in_features)."""
    dims = [input_size] + list(hidden_layers_sizes) + [1]
    params = []
    for i in range(len(dims) - 1):
        fan_in, fan_out = dims[i], dims[i + 1]
        key, kw, kb = jax.random.split(key, 3)
        bound = 1.0 / jnp.sqrt(jnp.float32(fan_in))
        w = jax.random.uniform(kw, (fan_out, fan_in), jnp.float32, -bound, bound)
        b = jax.random.uniform(kb, (fan_out,), jnp.float32, -bound, bound)
        params.append((w, b))
    return params


def _reference(x, params, compute_dtype):
    """Pure-JAX forward with the same dtype policy (bf16 or f32 compute)."""
    h = x.astype(compute_dtype)
    n = len(params)
    out = None
    for l, (w, b) in enumerate(params):
        z = jnp.dot(h, w.T.astype(compute_dtype),
                    preferred_element_type=jnp.float32) + b.astype(jnp.float32)
        if l < n - 1:
            h = jnp.maximum(z, 0.0).astype(compute_dtype)
        else:
            out = jax.nn.sigmoid(z)
    return out.astype(jnp.float32).reshape(-1, 1)


if __name__ == "__main__":
    input_size = 32
    hidden_layers_sizes = [32, 32, 32, 32, 32]
    batch = 256  # runs as a single lane-dense grid step on v5e/v6e, two on v7x

    key = jax.random.PRNGKey(0)
    key_x, key_p = jax.random.split(key)
    x = jax.random.normal(key_x, (batch, input_size), jnp.float32)
    params = init_params(key_p, input_size, hidden_layers_sizes)

    fwd = jax.jit(ffnet5_forward)
    out = fwd(x, params)
    jax.block_until_ready(out)
    assert out.shape == (batch, 1)

    # Tight check against a reference using the same bf16-weight / f32-accum math.
    ref_bf16 = _reference(x, params, jnp.bfloat16)
    assert jnp.allclose(out, ref_bf16, atol=2e-4, rtol=2e-4), (
        float(jnp.max(jnp.abs(out - ref_bf16))))

    # Loose check against the full-f32 (PyTorch-equivalent) math.
    ref_f32 = _reference(x, params, jnp.float32)
    assert float(jnp.max(jnp.abs(out - ref_f32))) < 2e-2

    print("KERNEL_OK")
</pallas_src>

<mosaic_0001>
module attributes {stable_mosaic.version = 11 : i64} {
  func.func @_ffnet5_kernel(%arg0: i32, %arg1: memref<256x32xf32, #tpu.memory_space<vmem>>, %arg2: memref<192x32xbf16, #tpu.memory_space<vmem>>, %arg3: memref<192x1xf32, #tpu.memory_space<vmem>>, %arg4: memref<1x256xf32, #tpu.memory_space<vmem>>) attributes {dimension_semantics = [#tpu.dimension_semantics<parallel>], iteration_bounds = array<i64: 1>, scalar_prefetch = 0 : i64, scratch_operands = 0 : i64, tpu.core_type = #tpu.core_type<tc>, window_params = [{transform_indices = @transform_0, window_bounds = array<i64: 256, 32>}, {pipeline_mode = #tpu.pipeline_mode<synchronous>, transform_indices = @transform_1, window_bounds = array<i64: 192, 32>}, {pipeline_mode = #tpu.pipeline_mode<synchronous>, transform_indices = @transform_2, window_bounds = array<i64: 192, 1>}, {transform_indices = @transform_3, window_bounds = array<i64: 1, 256>}]} {
    %c0 = arith.constant 0 : index
    %c0_0 = arith.constant 0 : index
    %0 = vector.load %arg1[%c0, %c0_0] : memref<256x32xf32, #tpu.memory_space<vmem>>, vector<256x32xf32>
    %1 = arith.truncf %0 : vector<256x32xf32> to vector<256x32xbf16>
    %c0_1 = arith.constant 0 : index
    %c0_2 = arith.constant 0 : index
    %2 = vector.load %arg2[%c0_1, %c0_2] : memref<192x32xbf16, #tpu.memory_space<vmem>>, vector<32x32xbf16>
    %cst = arith.constant dense<0.000000e+00> : vector<32x256xf32>
    %3 = tpu.matmul %2, %1, %cst {dimension_numbers = #tpu.dot_dimension_numbers<[1], [1], [0], [0], [0, 0, 1, 0], [], []>} : vector<32x32xbf16>, vector<256x32xbf16>, vector<32x256xf32> -> vector<32x256xf32>
    %c0_3 = arith.constant 0 : index
    %c0_4 = arith.constant 0 : index
    %4 = vector.load %arg3[%c0_3, %c0_4] : memref<192x1xf32, #tpu.memory_space<vmem>>, vector<32x1xf32>
    %5 = vector.broadcast %4 : vector<32x1xf32> to vector<32x256xf32>
    %6 = arith.addf %3, %5 : vector<32x256xf32>
    %7 = arith.truncf %6 : vector<32x256xf32> to vector<32x256xbf16>
    %cst_5 = arith.constant 0.000000e+00 : bf16
    %8 = vector.broadcast %cst_5 : bf16 to vector<32x256xbf16>
    %9 = arith.maximumf %7, %8 : vector<32x256xbf16>
    %c32 = arith.constant 32 : index
    %c0_6 = arith.constant 0 : index
    %10 = vector.load %arg2[%c32, %c0_6] : memref<192x32xbf16, #tpu.memory_space<vmem>>, vector<32x32xbf16>
    %cst_7 = arith.constant dense<0.000000e+00> : vector<32x256xf32>
    %11 = tpu.matmul %10, %9, %cst_7 {dimension_numbers = #tpu.dot_dimension_numbers<[1], [0], [0], [1], [0, 0, 1, 1], [], []>} : vector<32x32xbf16>, vector<32x256xbf16>, vector<32x256xf32> -> vector<32x256xf32>
    %c32_8 = arith.constant 32 : index
    %c0_9 = arith.constant 0 : index
    %12 = vector.load %arg3[%c32_8, %c0_9] : memref<192x1xf32, #tpu.memory_space<vmem>>, vector<32x1xf32>
    %13 = vector.broadcast %12 : vector<32x1xf32> to vector<32x256xf32>
    %14 = arith.addf %11, %13 : vector<32x256xf32>
    %15 = arith.truncf %14 : vector<32x256xf32> to vector<32x256xbf16>
    %cst_10 = arith.constant 0.000000e+00 : bf16
    %16 = vector.broadcast %cst_10 : bf16 to vector<32x256xbf16>
    %17 = arith.maximumf %15, %16 : vector<32x256xbf16>
    %c64 = arith.constant 64 : index
    %c0_11 = arith.constant 0 : index
    %18 = vector.load %arg2[%c64, %c0_11] : memref<192x32xbf16, #tpu.memory_space<vmem>>, vector<32x32xbf16>
    %cst_12 = arith.constant dense<0.000000e+00> : vector<32x256xf32>
    %19 = tpu.matmul %18, %17, %cst_12 {dimension_numbers = #tpu.dot_dimension_numbers<[1], [0], [0], [1], [0, 0, 1, 1], [], []>} : vector<32x32xbf16>, vector<32x256xbf16>, vector<32x256xf32> -> vector<32x256xf32>
    %c64_13 = arith.constant 64 : index
    %c0_14 = arith.constant 0 : index
    %20 = vector.load %arg3[%c64_13, %c0_14] : memref<192x1xf32, #tpu.memory_space<vmem>>, vector<32x1xf32>
    %21 = vector.broadcast %20 : vector<32x1xf32> to vector<32x256xf32>
    %22 = arith.addf %19, %21 : vector<32x256xf32>
    %23 = arith.truncf %22 : vector<32x256xf32> to vector<32x256xbf16>
    %cst_15 = arith.constant 0.000000e+00 : bf16
    %24 = vector.broadcast %cst_15 : bf16 to vector<32x256xbf16>
    %25 = arith.maximumf %23, %24 : vector<32x256xbf16>
    %c96 = arith.constant 96 : index
    %c0_16 = arith.constant 0 : index
    %26 = vector.load %arg2[%c96, %c0_16] : memref<192x32xbf16, #tpu.memory_space<vmem>>, vector<32x32xbf16>
    %cst_17 = arith.constant dense<0.000000e+00> : vector<32x256xf32>
    %27 = tpu.matmul %26, %25, %cst_17 {dimension_numbers = #tpu.dot_dimension_numbers<[1], [0], [0], [1], [0, 0, 1, 1], [], []>} : vector<32x32xbf16>, vector<32x256xbf16>, vector<32x256xf32> -> vector<32x256xf32>
    %c96_18 = arith.constant 96 : index
    %c0_19 = arith.constant 0 : index
    %28 = vector.load %arg3[%c96_18, %c0_19] : memref<192x1xf32, #tpu.memory_space<vmem>>, vector<32x1xf32>
    %29 = vector.broadcast %28 : vector<32x1xf32> to vector<32x256xf32>
    %30 = arith.addf %27, %29 : vector<32x256xf32>
    %31 = arith.truncf %30 : vector<32x256xf32> to vector<32x256xbf16>
    %cst_20 = arith.constant 0.000000e+00 : bf16
    %32 = vector.broadcast %cst_20 : bf16 to vector<32x256xbf16>
    %33 = arith.maximumf %31, %32 : vector<32x256xbf16>
    %c128 = arith.constant 128 : index
    %c0_21 = arith.constant 0 : index
    %34 = vector.load %arg2[%c128, %c0_21] : memref<192x32xbf16, #tpu.memory_space<vmem>>, vector<32x32xbf16>
    %cst_22 = arith.constant dense<0.000000e+00> : vector<32x256xf32>
    %35 = tpu.matmul %34, %33, %cst_22 {dimension_numbers = #tpu.dot_dimension_numbers<[1], [0], [0], [1], [0, 0, 1, 1], [], []>} : vector<32x32xbf16>, vector<32x256xbf16>, vector<32x256xf32> -> vector<32x256xf32>
    %c128_23 = arith.constant 128 : index
    %c0_24 = arith.constant 0 : index
    %36 = vector.load %arg3[%c128_23, %c0_24] : memref<192x1xf32, #tpu.memory_space<vmem>>, vector<32x1xf32>
    %37 = vector.broadcast %36 : vector<32x1xf32> to vector<32x256xf32>
    %38 = arith.addf %35, %37 : vector<32x256xf32>
    %39 = arith.truncf %38 : vector<32x256xf32> to vector<32x256xbf16>
    %cst_25 = arith.constant 0.000000e+00 : bf16
    %40 = vector.broadcast %cst_25 : bf16 to vector<32x256xbf16>
    %41 = arith.maximumf %39, %40 : vector<32x256xbf16>
    %c160 = arith.constant 160 : index
    %c0_26 = arith.constant 0 : index
    %42 = vector.load %arg2[%c160, %c0_26] : memref<192x32xbf16, #tpu.memory_space<vmem>>, vector<8x32xbf16>
    %cst_27 = arith.constant dense<0.000000e+00> : vector<8x256xf32>
    %43 = tpu.matmul %42, %41, %cst_27 {dimension_numbers = #tpu.dot_dimension_numbers<[1], [0], [0], [1], [0, 0, 1, 1], [], []>} : vector<8x32xbf16>, vector<32x256xbf16>, vector<8x256xf32> -> vector<8x256xf32>
    %44 = vector.extract_strided_slice %43 {offsets = [0, 0], sizes = [1, 256], strides = [1, 1]} : vector<8x256xf32> to vector<1x256xf32>
    %c160_28 = arith.constant 160 : index
    %c0_29 = arith.constant 0 : index
    %45 = vector.load %arg3[%c160_28, %c0_29] : memref<192x1xf32, #tpu.memory_space<vmem>>, vector<1x1xf32>
    %46 = vector.broadcast %45 : vector<1x1xf32> to vector<1x256xf32>
    %47 = arith.addf %44, %46 : vector<1x256xf32>
    %48 = arith.negf %47 : vector<1x256xf32>
    %49 = math.exp %48 : vector<1x256xf32>
    %cst_30 = arith.constant 1.000000e+00 : f32
    %50 = vector.broadcast %cst_30 : f32 to vector<1x256xf32>
    %51 = arith.addf %50, %49 : vector<1x256xf32>
    %52 = arith.divf %50, %51 : vector<1x256xf32>
    %c0_31 = arith.constant 0 : index
    %c0_32 = arith.constant 0 : index
    %53 = vector.load %arg4[%c0_31, %c0_32] : memref<1x256xf32, #tpu.memory_space<vmem>>, vector<1x256xf32>
    tpu.vector_store %arg4[%c0_31, %c0_32], %52 {strides = array<i32>} : memref<1x256xf32, #tpu.memory_space<vmem>>, vector<1x256xf32>,
    return
  }
  func.func @transform_0(%arg0: i32) -> (i32, i32) {
    %c0_i32 = arith.constant 0 : i32
    %c0_i32_0 = arith.constant 0 : i32
    return %arg0, %c0_i32 : i32, i32
  }
  func.func @transform_1(%arg0: i32) -> (i32, i32) {
    %c0_i32 = arith.constant 0 : i32
    %c0_i32_0 = arith.constant 0 : i32
    %c0_i32_1 = arith.constant 0 : i32
    return %c0_i32, %c0_i32_0 : i32, i32
  }
  func.func @transform_2(%arg0: i32) -> (i32, i32) {
    %c0_i32 = arith.constant 0 : i32
    %c0_i32_0 = arith.constant 0 : i32
    %c0_i32_1 = arith.constant 0 : i32
    return %c0_i32, %c0_i32_0 : i32, i32
  }
  func.func @transform_3(%arg0: i32) -> (i32, i32) {
    %c0_i32 = arith.constant 0 : i32
    %c0_i32_0 = arith.constant 0 : i32
    return %c0_i32, %arg0 : i32, i32
  }
}

</mosaic_0001>

<bundles_post_ra>
// kernel: ffnet5_forward.1
= control target key start
LH: loop header
LB: loop body
LE: loop exit
PB: predicated region body
PF: predicated region fallthrough
CT: control target
= control target key end

     0   :  { %vm102_vm0 = vcmask 261120   ;;  %v838_v7 = vmov 0   ;;  %s1129_s0 = inlined_call_operand.vmem [shape: f32[256,32], index: 0, kind: input, shape index: {}]   ;;  %s1130_s1 = inlined_call_operand.vmem [shape: bf16[192,32], index: 1, kind: input, shape index: {}]   ;;  %s1131_s2 = inlined_call_operand.vmem [shape: f32[192,1], index: 2, kind: input, shape index: {}]   ;;  %s1132_s3 = inlined_call_operand.hbm [shape: f32[1,256], index: 3, kind: output, shape index: {}]  }
   0x1   :  { %v32_v0 = vld [vmem:[%s1129_s0 + $0x80] sm:$0xff]  ;;  %v33_v1 = vld [vmem:[%s1129_s0 + $0x88] sm:$0xff]  ;;  %v34_v5 = vld [vmem:[%s1129_s0 + $0x90] sm:$0xff]  ;;  %794 = vset.pattern.permute.xlu0 %v838_v7  ;;  %795 = vset.pattern.permute.xlu1 %v838_v7 }
   0x2   :  { %v16_v2 = vld [vmem:[%s1129_s0] sm:$0xff]  ;;  %v56_v3 = vpack.c.bf16 %v33_v1, %v32_v0  ;;  %v17_v4 = vld [vmem:[%s1129_s0 + $0x8] sm:$0xff]  ;;  %v35_v6 = vld [vmem:[%s1129_s0 + $0x98] sm:$0xff]  ;;  %294 = vmatprep.mubr.bf16.mxu1 %v838_v7 }
   0x3   :  { %v48_v8 = vpack.c.bf16 %v17_v4, %v16_v2  ;;  %v57_v9 = vpack.c.bf16 %v35_v6, %v34_v5  ;;  %v18_v10 = vld [vmem:[%s1129_s0 + $0x10] sm:$0xff]  ;;  %v19_v11 = vld [vmem:[%s1129_s0 + $0x18] sm:$0xff]  ;;  %v36_v14 = vld [vmem:[%s1129_s0 + $0xa0] sm:$0xff] }
   0x4   :  { %783 = vmatprep.subr.msk.bf16.mxu0 %vm102_vm0, %v56_v3  ;;  %v49_v13 = vpack.c.bf16 %v19_v11, %v18_v10  ;;  %v37_v15 = vld [vmem:[%s1129_s0 + $0xa8] sm:$0xff]  ;;  %v20_v18 = vld [vmem:[%s1129_s0 + $0x20] sm:$0xff]  ;;  %v70_v22 = vld [vmem:[%s1131_s2 + $0x10] sm:$0xff] }
   0x5   :  { %v110_v12 = vsel %vm102_vm0, %v48_v8, 0  ;;  %v58_v17 = vpack.c.bf16 %v37_v15, %v36_v14  ;;  %v21_v19 = vld [vmem:[%s1129_s0 + $0x28] sm:$0xff]  ;;  %v907_v20 = vld [vmem:[%s1130_s1] sm:$0xff]   ;;  %v38_v24 = vld [vmem:[%s1129_s0 + $0xb0] sm:$0xff]  ;;  %84 = vperm.xlu1 %795, %v70_v22  }
   0x6   :  { %764 = vmatpush3.bf16.xpose.msra.mxu0 %v110_v12  ;;  %v113_v16 = vsel %vm102_vm0, %v49_v13, 0  ;;  %v68_v21 = vld [vmem:[%s1131_s2] sm:$0xff]  ;;  %779 = vmatprep.mubr.msk.bf16.mxu0 %vm102_vm0, %v907_v20  ;;  %v50_v23 = vpack.c.bf16 %v21_v19, %v20_v18  ;;  %v39_v25 = vld [vmem:[%s1129_s0 + $0xb8] sm:$0xff]  ;;  %v69_v26 = vld [vmem:[%s1131_s2 + $0x8] sm:$0xff] }
   0x7   :  { %784 = vmatprep.subr.msk.bf16.mxu0 %vm102_vm0, %v57_v9  ;;  %74 = vperm.xlu0 %794, %v68_v21   ;;  %v71_v27 = vld [vmem:[%s1131_s2 + $0x18] sm:$0xff]  ;;  %v59_v29 = vpack.c.bf16 %v39_v25, %v38_v24  ;;  %v22_v30 = vld [vmem:[%s1129_s0 + $0x30] sm:$0xff]  ;;  %v222_v32 = vld [vmem:[%s1131_s2 + $0x20] sm:$0xff] }
   0x8   :  { %v116_v28 = vsel %vm102_vm0, %v50_v23, 0  ;;  %v23_v31 = vld [vmem:[%s1129_s0 + $0x38] sm:$0xff]  ;;  %v223_v33 = vld [vmem:[%s1131_s2 + $0x28] sm:$0xff]  ;;  %v40_v34 = vld [vmem:[%s1129_s0 + $0xc0] sm:$0xff] }
   0x9   :  { %89 = vperm.xlu1 %795, %v71_v27   ;;  %v41_v35 = vld [vmem:[%s1129_s0 + $0xc8] sm:$0xff]  ;;  %v224_v36 = vld [vmem:[%s1131_s2 + $0x30] sm:$0xff]  ;;  %v51_v37 = vpack.c.bf16 %v23_v31, %v22_v30  ;;  %v225_v38 = vld [vmem:[%s1131_s2 + $0x38] sm:$0xff] }
   0xb   :  { %79 = vperm.xlu0 %794, %v69_v26  }
   0xd   :  { %233 = vperm.xlu1 %795, %v223_v33  }
   0xe   :  { %766 = vmatpush3.bf16.xpose.msra.mxu0 %v113_v16 }
   0xf   :  { %785 = vmatprep.subr.msk.bf16.mxu0 %vm102_vm0, %v58_v17  ;;  %228 = vperm.xlu0 %794, %v222_v32  }
  0x16   :  { %768 = vmatpush3.bf16.xpose.msra.mxu0 %v116_v28 }
  0x17   :  { %786 = vmatprep.subr.msk.bf16.mxu0 %vm102_vm0, %v59_v29 }
  0x18   :  { %8 = vsyncpa [#allocation3], 0  ;;  %v119_v39 = vsel %vm102_vm0, %v51_v37, 0  ;;  %v60_v40 = vpack.c.bf16 %v41_v35, %v40_v34  ;;  %238 = vperm.xlu0 %794, %v224_v36   ;;  %v24_v41 = vld [vmem:[%s1129_s0 + $0x40] sm:$0xff]  ;;  %v25_v42 = vld [vmem:[%s1129_s0 + $0x48] sm:$0xff]  ;;  %243 = vperm.xlu1 %795, %v225_v38  }
  0x19   :  { %v327_v43 = vld [vmem:[%s1131_s2 + $0x40] sm:$0xff]  ;;  %v328_v44 = vld [vmem:[%s1131_s2 + $0x48] sm:$0xff]  ;;  %v52_v45 = vpack.c.bf16 %v25_v42, %v24_v41  ;;  %v42_v46 = vld [vmem:[%s1129_s0 + $0xd0] sm:$0xff] }
  0x1a   :  { %v43_v47 = vld [vmem:[%s1129_s0 + $0xd8] sm:$0xff]  ;;  %v329_v48 = vld [vmem:[%s1131_s2 + $0x50] sm:$0xff]  ;;  %v432_v54 = vld [vmem:[%s1131_s2 + $0x60] sm:$0xff] }
  0x1b   :  { %v330_v49 = vld [vmem:[%s1131_s2 + $0x58] sm:$0xff]  ;;  %v122_v50 = vsel %vm102_vm0, %v52_v45, 0  ;;  %v61_v51 = vpack.c.bf16 %v43_v47, %v42_v46  ;;  %v26_v52 = vld [vmem:[%s1129_s0 + $0x50] sm:$0xff]  ;;  %v433_v55 = vld [vmem:[%s1131_s2 + $0x68] sm:$0xff] }
  0x1c   :  { %333 = vperm.xlu0 %794, %v327_v43   ;;  %338 = vperm.xlu1 %795, %v328_v44   ;;  %v27_v53 = vld [vmem:[%s1129_s0 + $0x58] sm:$0xff]  ;;  %v44_v57 = vld [vmem:[%s1129_s0 + $0xe0] sm:$0xff]  ;;  %v45_v58 = vld [vmem:[%s1129_s0 + $0xe8] sm:$0xff] }
  0x1d   :  { %v53_v56 = vpack.c.bf16 %v27_v53, %v26_v52  ;;  %v434_v59 = vld [vmem:[%s1131_s2 + $0x70] sm:$0xff]  ;;  %v435_v60 = vld [vmem:[%s1131_s2 + $0x78] sm:$0xff]  ;;  %v62_v62 = vpack.c.bf16 %v45_v58, %v44_v57  ;;  %v28_v63 = vld [vmem:[%s1129_s0 + $0x60] sm:$0xff] }
  0x1e   :  { %770 = vmatpush3.bf16.xpose.msra.mxu0 %v119_v39  ;;  %v29_v0 = vld [vmem:[%s1129_s0 + $0x68] sm:$0xff]  ;;  %v537_v1 = vld [vmem:[%s1131_s2 + $0x80] sm:$0xff]  ;;  %v46_v4 = vld [vmem:[%s1129_s0 + $0xf0] sm:$0xff] }
  0x1f   :  { %787 = vmatprep.subr.msk.bf16.mxu0 %vm102_vm0, %v60_v40  ;;  %v125_v61 = vsel %vm102_vm0, %v53_v56, 0  ;;  %v538_v2 = vld [vmem:[%s1131_s2 + $0x88] sm:$0xff]  ;;  %v54_v3 = vpack.c.bf16 %v29_v0, %v28_v63  ;;  %v47_v5 = vld [vmem:[%s1129_s0 + $0xf8] sm:$0xff]  ;;  %v539_v6 = vld [vmem:[%s1131_s2 + $0x90] sm:$0xff] }
  0x20   :  { %343 = vperm.xlu0 %794, %v329_v48   ;;  %348 = vperm.xlu1 %795, %v330_v49   ;;  %v540_v8 = vld [vmem:[%s1131_s2 + $0x98] sm:$0xff]  ;;  %v63_v10 = vpack.c.bf16 %v47_v5, %v46_v4  ;;  %v30_v11 = vld [vmem:[%s1129_s0 + $0x70] sm:$0xff]  ;;  %v683_v13 = vld [vmem:[%s1131_s2 + $0xa0] sm:$0x1] }
  0x21   :  { %v128_v9 = vsel %vm102_vm0, %v54_v3, 0  ;;  %v31_v12 = vld [vmem:[%s1129_s0 + $0x78] sm:$0xff]  ;;  %v797_v16 = vld [vmem:[%s1130_s1 + $0x8] sm:$0xff]   ;;  %v798_v45 = vld [vmem:[%s1130_s1 + $0x10] sm:$0xff]  }
  0x22   :  { %v55_v14 = vpack.c.bf16 %v31_v12, %v30_v11  ;;  %v799_v46 = vld [vmem:[%s1130_s1 + $0x18] sm:$0xff]   ;;  %v800_v12 = vld [vmem:[%s1130_s1 + $0x20] sm:$0xff]  }
  0x24   :  { %438 = vperm.xlu0 %794, %v432_v54   ;;  %443 = vperm.xlu1 %795, %v433_v55   ;;  %v131_v15 = vsel %vm102_vm0, %v55_v14, 0 }
  0x26   :  { %772 = vmatpush3.bf16.xpose.msra.mxu0 %v122_v50 }
  0x27   :  { %788 = vmatprep.subr.msk.bf16.mxu0 %vm102_vm0, %v61_v51 }
  0x28   :  { %448 = vperm.xlu0 %794, %v434_v59   ;;  %453 = vperm.xlu1 %795, %v435_v60  }
  0x2c   :  { %543 = vperm.xlu0 %794, %v537_v1   ;;  %548 = vperm.xlu1 %795, %v538_v2  }
  0x2e   :  { %774 = vmatpush3.bf16.xpose.msra.mxu0 %v125_v61 }
  0x2f   :  { %789 = vmatprep.subr.msk.bf16.mxu0 %vm102_vm0, %v62_v62 }
  0x30   :  { %553 = vperm.xlu0 %794, %v539_v6   ;;  %558 = vperm.xlu1 %795, %v540_v8  }
  0x34   :  { %686 = vperm.xlu0 %794, %v683_v13   ;;  %v801_v13 = vld [vmem:[%s1130_s1 + $0x28] sm:$0xff]  }
  0x36   :  { %776 = vmatpush3.bf16.xpose.msra.mxu0 %v128_v9 }
  0x37   :  { %790 = vmatprep.subr.msk.bf16.mxu0 %vm102_vm0, %v63_v10 }
  0x3e   :  { %778 = vmatpush3.bf16.xpose.msra.mxu0 %v131_v15 }
  0x45   :  { %780 = vmatmul.mubr.msk.bf16.vlgmr.msra.gmra.mrb[0].mxu0 %vm102_vm0, %v907_v20 }
  0x46   :  { %781 = vmatprep.mubr.msk.bf16.mxu0 %vm102_vm0, %v797_v16 }
  0x4d   :  { %782 = vmatmul.mubr.msk.bf16.gmra.mrb[4].mxu0 %vm102_vm0, %v797_v16 }
  0x84   :  { %v85_v26 = vpop.permute.xlu1 %84 }
  0x86   :  { %v75_v17 = vpop.permute.xlu0 %74 }
  0x88   :  { %v90_v34 = vpop.permute.xlu1 %89 }
  0x8a   :  { %v80_v21 = vpop.permute.xlu0 %79 }
  0x8c   :  { %v234_v50 = vpop.permute.xlu1 %233 }
  0x8e   :  { %v229_v48 = vpop.permute.xlu0 %228 }
  0x97   :  { %v239_v61 = vpop.permute.xlu0 %238  ;;  %v244_v0 = vpop.permute.xlu1 %243 }
  0x9b   :  { %v334_v15 = vpop.permute.xlu0 %333 }
 0x118   :  { %v191_v18 = vpop.f32.mrb[0].mxu0 }
 0x119   :  { %v193_v19 = vpop.f32.mrb[1].mxu0  ;;  %v192_v23 = vadd.f32 %v191_v18, %v75_v17 }
 0x11a   :  { %v195_v22 = vpop.f32.mrb[2].mxu0  ;;  %v194_v27 = vadd.f32 %v193_v19, %v75_v17  ;;  %v339_v17 = vpop.permute.xlu1 %338 }
 0x11b   :  { %v196_v24 = vadd.f32 %v195_v22, %v80_v21  ;;  %v197_v25 = vpop.f32.mrb[3].mxu0 }
 0x11c   :  { %v198_v28 = vadd.f32 %v197_v25, %v80_v21 }
 0x11d   :  { %v210_v29 = vpack.c.bf16 %v196_v24, %v192_v23 }
 0x11e   :  { %v211_v30 = vpack.c.bf16 %v198_v28, %v194_v27 }
 0x11f   :  { %v214_v33 = vmax.bf16 %v838_v7, %v210_v29  ;;  %v344_v29 = vpop.permute.xlu0 %343 }
 0x120   :  { %v201_v31 = vpop.f32.mrb[4].mxu0  ;;  %v215_v20 = vmax.bf16 %v838_v7, %v211_v30 }
 0x121   :  { %v203_v32 = vpop.f32.mrb[5].mxu0  ;;  %v202_v36 = vadd.f32 %v201_v31, %v85_v26 }
 0x122   :  { %v205_v35 = vpop.f32.mrb[6].mxu0  ;;  %262 = vmatprep.subr.bf16.mxu1 %v215_v20  ;;  %v204_v39 = vadd.f32 %v203_v32, %v85_v26  ;;  %v349_v20 = vpop.permute.xlu1 %348 }
 0x123   :  { %v206_v37 = vadd.f32 %v205_v35, %v90_v34  ;;  %v207_v38 = vpop.f32.mrb[7].mxu0  ;;  %263 = vmatpush1.bf16.msra.mxu1 %v214_v33 }
 0x124   :  { %v208_v40 = vadd.f32 %v207_v38, %v90_v34 }
 0x125   :  { %v212_v41 = vpack.c.bf16 %v206_v37, %v202_v36 }
 0x126   :  { %v213_v42 = vpack.c.bf16 %v208_v40, %v204_v39 }
 0x127   :  { %v216_v44 = vmax.bf16 %v838_v7, %v212_v41 }
 0x128   :  { %v217_v43 = vmax.bf16 %v838_v7, %v213_v42  ;;  %v802_v42 = vld [vmem:[%s1130_s1 + $0x30] sm:$0xff]  }
 0x12a   :  { %264 = vmatprep.subr.bf16.mxu1 %v217_v43  ;;  %v803_v43 = vld [vmem:[%s1130_s1 + $0x38] sm:$0xff]  }
 0x12b   :  { %265 = vmatpush1.bf16.msra.mxu1 %v216_v44 }
 0x12e   :  { %746 = vmatmul.mubr.msk.bf16.vlgmr.msra.gmra.mrb[0].mxu1 %vm102_vm0, %v798_v45  ;;  %v439_v45 = vpop.permute.xlu0 %438 }
 0x12f   :  { %304 = vmatprep.mubr.bf16.mxu1 %v838_v7 }
 0x136   :  { %747 = vmatmul.mubr.msk.bf16.gmra.mrb[4].mxu1 %vm102_vm0, %v799_v46 }
 0x137   :  { %399 = vmatprep.mubr.bf16.mxu1 %v838_v7 }
 0x201   :  { %v296_v47 = vpop.f32.mrb[0].mxu1 }
 0x202   :  { %v298_v49 = vpop.f32.mrb[1].mxu1  ;;  %v297_v52 = vadd.f32 %v296_v47, %v229_v48  ;;  %v444_v47 = vpop.permute.xlu1 %443 }
 0x203   :  { %v300_v51 = vpop.f32.mrb[2].mxu1  ;;  %v299_v55 = vadd.f32 %v298_v49, %v229_v48 }
 0x204   :  { %v301_v53 = vadd.f32 %v300_v51, %v234_v50  ;;  %v302_v54 = vpop.f32.mrb[3].mxu1 }
 0x205   :  { %v303_v56 = vadd.f32 %v302_v54, %v234_v50 }
 0x206   :  { %v315_v57 = vpack.c.bf16 %v301_v53, %v297_v52 }
 0x207   :  { %v316_v58 = vpack.c.bf16 %v303_v56, %v299_v55 }
 0x208   :  { %v319_v62 = vmax.bf16 %v838_v7, %v315_v57 }
 0x209   :  { %v306_v59 = vpop.f32.mrb[4].mxu1  ;;  %v320_v60 = vmax.bf16 %v838_v7, %v316_v58  ;;  %v449_v58 = vpop.permute.xlu0 %448 }
 0x20a   :  { %v308_v63 = vpop.f32.mrb[5].mxu1  ;;  %v307_v2 = vadd.f32 %v306_v59, %v239_v61 }
 0x20b   :  { %v310_v1 = vpop.f32.mrb[6].mxu1  ;;  %367 = vmatprep.subr.bf16.mxu1 %v320_v60  ;;  %v309_v5 = vadd.f32 %v308_v63, %v239_v61  ;;  %v454_v61 = vpop.permute.xlu1 %453 }
 0x20c   :  { %v311_v3 = vadd.f32 %v310_v1, %v244_v0  ;;  %v312_v4 = vpop.f32.mrb[7].mxu1  ;;  %368 = vmatpush1.bf16.msra.mxu1 %v319_v62 }
 0x20d   :  { %v313_v6 = vadd.f32 %v312_v4, %v244_v0 }
 0x20e   :  { %v317_v8 = vpack.c.bf16 %v311_v3, %v307_v2 }
 0x20f   :  { %v318_v9 = vpack.c.bf16 %v313_v6, %v309_v5 }
 0x210   :  { %v321_v11 = vmax.bf16 %v838_v7, %v317_v8 }
 0x211   :  { %v322_v10 = vmax.bf16 %v838_v7, %v318_v9  ;;  %v804_v9 = vld [vmem:[%s1130_s1 + $0x40] sm:$0xff]  }
 0x213   :  { %369 = vmatprep.subr.bf16.mxu1 %v322_v10  ;;  %v805_v10 = vld [vmem:[%s1130_s1 + $0x48] sm:$0xff]  }
 0x214   :  { %370 = vmatpush1.bf16.msra.mxu1 %v321_v11 }
 0x217   :  { %750 = vmatmul.mubr.msk.bf16.vlgmr.msra.gmra.mrb[8].mxu1 %vm102_vm0, %v800_v12  ;;  %v544_v12 = vpop.permute.xlu0 %543 }
 0x218   :  { %409 = vmatprep.mubr.bf16.mxu1 %v838_v7 }
 0x21f   :  { %751 = vmatmul.mubr.msk.bf16.gmra.mrb[12].mxu1 %vm102_vm0, %v801_v13 }
 0x220   :  { %504 = vmatprep.mubr.bf16.mxu1 %v838_v7 }
 0x2ea   :  { %v401_v14 = vpop.f32.mrb[8].mxu1 }
 0x2eb   :  { %v403_v16 = vpop.f32.mrb[9].mxu1  ;;  %v402_v19 = vadd.f32 %v401_v14, %v334_v15  ;;  %v549_v14 = vpop.permute.xlu1 %548 }
 0x2ec   :  { %v405_v18 = vpop.f32.mrb[10].mxu1  ;;  %v404_v23 = vadd.f32 %v403_v16, %v334_v15 }
 0x2ed   :  { %v406_v21 = vadd.f32 %v405_v18, %v339_v17  ;;  %v407_v22 = vpop.f32.mrb[11].mxu1 }
 0x2ee   :  { %v408_v24 = vadd.f32 %v407_v22, %v339_v17 }
 0x2ef   :  { %v420_v25 = vpack.c.bf16 %v406_v21, %v402_v19 }
 0x2f0   :  { %v421_v26 = vpack.c.bf16 %v408_v24, %v404_v23 }
 0x2f1   :  { %v424_v30 = vmax.bf16 %v838_v7, %v420_v25 }
 0x2f2   :  { %v411_v27 = vpop.f32.mrb[12].mxu1  ;;  %v425_v28 = vmax.bf16 %v838_v7, %v421_v26  ;;  %v554_v26 = vpop.permute.xlu0 %553 }
 0x2f3   :  { %v413_v31 = vpop.f32.mrb[13].mxu1  ;;  %v412_v33 = vadd.f32 %v411_v27, %v344_v29 }
 0x2f4   :  { %v415_v32 = vpop.f32.mrb[14].mxu1  ;;  %472 = vmatprep.subr.bf16.mxu1 %v425_v28  ;;  %v414_v36 = vadd.f32 %v413_v31, %v344_v29  ;;  %v559_v29 = vpop.permute.xlu1 %558 }
 0x2f5   :  { %v416_v34 = vadd.f32 %v415_v32, %v349_v20  ;;  %v417_v35 = vpop.f32.mrb[15].mxu1  ;;  %473 = vmatpush1.bf16.msra.mxu1 %v424_v30 }
 0x2f6   :  { %v418_v37 = vadd.f32 %v417_v35, %v349_v20 }
 0x2f7   :  { %v422_v38 = vpack.c.bf16 %v416_v34, %v412_v33 }
 0x2f8   :  { %v423_v39 = vpack.c.bf16 %v418_v37, %v414_v36 }
 0x2f9   :  { %v426_v41 = vmax.bf16 %v838_v7, %v422_v38 }
 0x2fa   :  { %v427_v40 = vmax.bf16 %v838_v7, %v423_v39  ;;  %v638_v39 = vld [vmem:[%s1130_s1 + $0x50] sm:$0xf]  ;;  %s840_s1 = smov [#allocation2]  }
 0x2fb   :  { %s732_s30 = sshll.u32 %s840_s1, 4  ;;  %s733_s30 = int_to_ptr.vmem [resolvable:$true] %s732_s30 }
 0x2fc   :  { %474 = vmatprep.subr.bf16.mxu1 %v427_v40  ;;  %v687_v40 = vpop.permute.xlu0 %686  ;;  %s814_s4 = scalar_lea.vmem %s733_s30, 32  ;;  %p819_p1 = scmp.lt.s32.totalorder %s733_s30, %s733_s30 }
 0x2fd   :  { %475 = vmatpush1.bf16.msra.mxu1 %v426_v41  ;;  %p815_p0 = scmp.ne.s32.totalorder %s733_s30, %s814_s4  ;;  %p820_p2 = scmp.lt.s32.totalorder %s814_s4, %s814_s4 }
 0x2ff   :  { %p821_p3 = por %p820_p2, %p819_p1 }
 0x300   :  { %754 = vmatmul.mubr.msk.bf16.vlgmr.msra.gmra.mrb[16].mxu1 %vm102_vm0, %v802_v42 }
 0x301   :  { %514 = vmatprep.mubr.bf16.mxu1 %v838_v7  ;;  %p822_p4 = pnand %p821_p3, %p815_p0 }
 0x308   :  { %755 = vmatmul.mubr.msk.bf16.gmra.mrb[20].mxu1 %vm102_vm0, %v803_v43 }
 0x309   :  { %609 = vmatprep.mubr.bf16.mxu1 %v838_v7 }
 0x3d3   :  { %v506_v44 = vpop.f32.mrb[16].mxu1 }
 0x3d4   :  { %v508_v46 = vpop.f32.mrb[17].mxu1  ;;  %v507_v49 = vadd.f32 %v506_v44, %v439_v45 }
 0x3d5   :  { %v510_v48 = vpop.f32.mrb[18].mxu1  ;;  %v509_v52 = vadd.f32 %v508_v46, %v439_v45 }
 0x3d6   :  { %v511_v50 = vadd.f32 %v510_v48, %v444_v47  ;;  %v512_v51 = vpop.f32.mrb[19].mxu1 }
 0x3d7   :  { %v513_v53 = vadd.f32 %v512_v51, %v444_v47 }
 0x3d8   :  { %v525_v54 = vpack.c.bf16 %v511_v50, %v507_v49 }
 0x3d9   :  { %v526_v55 = vpack.c.bf16 %v513_v53, %v509_v52  ;;  %v839_v52 = vmov 1966171168  }
 0x3da   :  { %v529_v59 = vmax.bf16 %v838_v7, %v525_v54  ;;  %v707_v53 = vunpack.c.l.s4 %v839_v52  ;;  %v709_v54 = vlaneseq }
 0x3db   :  { %v516_v56 = vpop.f32.mrb[20].mxu1  ;;  %v530_v57 = vmax.bf16 %v838_v7, %v526_v55 }
 0x3dc   :  { %v518_v60 = vpop.f32.mrb[21].mxu1  ;;  %v517_v63 = vadd.f32 %v516_v56, %v449_v58  ;;  %v708_v55 = vunpack.c.0.s8 %v707_v53  ;;  %v710_v56 = vshrl.u32 %v709_v54, 7  ;;  %vm723_vm1 = vcmp.lt.s32.totalorder %v709_v54, 256 }
 0x3dd   :  { %v520_v62 = vpop.f32.mrb[22].mxu1  ;;  %577 = vmatprep.subr.bf16.mxu1 %v530_v57  ;;  %v519_v2 = vadd.f32 %v518_v60, %v449_v58 }
 0x3de   :  { %v521_v0 = vadd.f32 %v520_v62, %v454_v61  ;;  %v522_v1 = vpop.f32.mrb[23].mxu1  ;;  %578 = vmatpush1.bf16.msra.mxu1 %v529_v59  ;;  %v711_v58 = vsub.s32 %v708_v55, %v710_v56 }
 0x3df   :  { %v523_v3 = vadd.f32 %v522_v1, %v454_v61 }
 0x3e0   :  { %v527_v4 = vpack.c.bf16 %v521_v0, %v517_v63 }
 0x3e1   :  { %v528_v5 = vpack.c.bf16 %v523_v3, %v519_v2 }
 0x3e2   :  { %v531_v8 = vmax.bf16 %v838_v7, %v527_v4 }
 0x3e3   :  { %v532_v6 = vmax.bf16 %v838_v7, %v528_v5 }
 0x3e5   :  { %579 = vmatprep.subr.bf16.mxu1 %v532_v6 }
 0x3e6   :  { %580 = vmatpush1.bf16.msra.mxu1 %v531_v8 }
 0x3e9   :  { %758 = vmatmul.mubr.msk.bf16.vlgmr.msra.gmra.mrb[24].mxu1 %vm102_vm0, %v804_v9 }
 0x3ea   :  { %619 = vmatprep.mubr.bf16.mxu1 %v838_v7 }
 0x3f1   :  { %759 = vmatmul.mubr.msk.bf16.gmra.mrb[28].mxu1 %vm102_vm0, %v805_v10 }
 0x3f2   :  { %674 = vmatprep.mubr.bf16.mxu1 %v838_v7 }
 0x4bc   :  { %v611_v11 = vpop.f32.mrb[24].mxu1 }
 0x4bd   :  { %v613_v13 = vpop.f32.mrb[25].mxu1  ;;  %v612_v16 = vadd.f32 %v611_v11, %v544_v12 }
 0x4be   :  { %v615_v15 = vpop.f32.mrb[26].mxu1  ;;  %v614_v19 = vadd.f32 %v613_v13, %v544_v12 }
 0x4bf   :  { %v616_v17 = vadd.f32 %v615_v15, %v549_v14  ;;  %v617_v18 = vpop.f32.mrb[27].mxu1 }
 0x4c0   :  { %v618_v21 = vadd.f32 %v617_v18, %v549_v14 }
 0x4c1   :  { %v630_v22 = vpack.c.bf16 %v616_v17, %v612_v16 }
 0x4c2   :  { %v631_v23 = vpack.c.bf16 %v618_v21, %v614_v19 }
 0x4c3   :  { %v634_v27 = vmax.bf16 %v838_v7, %v630_v22 }
 0x4c4   :  { %v621_v24 = vpop.f32.mrb[28].mxu1  ;;  %v635_v25 = vmax.bf16 %v838_v7, %v631_v23 }
 0x4c5   :  { %v623_v28 = vpop.f32.mrb[29].mxu1  ;;  %v622_v31 = vadd.f32 %v621_v24, %v554_v26 }
 0x4c6   :  { %v625_v30 = vpop.f32.mrb[30].mxu1  ;;  %642 = vmatprep.subr.bf16.mxu1 %v635_v25  ;;  %v624_v33 = vadd.f32 %v623_v28, %v554_v26 }
 0x4c7   :  { %v626_v20 = vadd.f32 %v625_v30, %v559_v29  ;;  %v627_v32 = vpop.f32.mrb[31].mxu1  ;;  %643 = vmatpush1.bf16.msra.mxu1 %v634_v27 }
 0x4c8   :  { %v628_v34 = vadd.f32 %v627_v32, %v559_v29 }
 0x4c9   :  { %v632_v35 = vpack.c.bf16 %v626_v20, %v622_v31 }
 0x4ca   :  { %v633_v36 = vpack.c.bf16 %v628_v34, %v624_v33 }
 0x4cb   :  { %v636_v38 = vmax.bf16 %v838_v7, %v632_v35 }
 0x4cc   :  { %v637_v37 = vmax.bf16 %v838_v7, %v633_v36 }
 0x4ce   :  { %644 = vmatprep.subr.bf16.mxu1 %v637_v37 }
 0x4cf   :  { %645 = vmatpush1.bf16.msra.mxu1 %v636_v38 }
 0x4d2   :  { %760 = vmatmul.mubr.msk.bf16.vlgmr.msra.gmra.mrb[32].mxu1 %vm102_vm0, %v638_v39 }
 0x5a5   :  { %v676_v41 = vpop.f32.mrb[32].mxu1 }
 0x5a6   :  { %v689_v42 = vadd.f32 %v687_v40, %v676_v41  ;;  %v678_v43 = vpop.f32.mrb[33].mxu1 }
 0x5a7   :  { %v690_v44 = vadd.f32 %v687_v40, %v678_v43  ;;  %v680_v45 = vpop.f32.mrb[34].mxu1 }
 0x5a8   :  { %v761_v46 = vmul.f32 -1.442695, %v689_v42  ;;  %v681_v47 = vpop.f32.mrb[35].mxu1 }
 0x5a9   :  { %v762_v48 = vmul.f32 -1.442695, %v690_v44 }
 0x5aa   :  { %806 = vpow2.f32 %v761_v46 }
 0x5ab   :  { %808 = vpow2.f32 %v762_v48 }
 0x5b4   :  { %v807_v7 = vpop.eup %806 }
 0x5b5   :  { %v809_v49 = vpop.eup %808  ;;  %v697_v50 = vadd.f32 1.0, %v807_v7 }
 0x5b6   :  { %v698_v51 = vadd.f32 1.0, %v809_v49 }
 0x5b7   :  { %810 = vrcp.f32 %v697_v50 }
 0x5b8   :  { %812 = vrcp.f32 %v698_v51 }
 0x5c1   :  { %v811_v57 = vpop.eup %810 }
 0x5c2   :  { %v813_v59 = vpop.eup %812 }
 0x5c3   :  { %v705_v60 = vcombine.low %v811_v57, %v813_v59 }
 0x5c5   :  { %v712_v61 = vrot.slane %v705_v60, %v711_v58 }
 0x5c7   :  { %v719_v62 = vrot.slane %v712_v61, %v711_v58 }
 0x5c9   :  { %725 = vst.msk [vmem:[#allocation2] sm:$0x3] %vm723_vm1, %v719_v62 }
 0x5ca   :  { %825 = shalt.err (!%p822_p4)
}
 0x5cb   :  { %s826_s7 = scalar_lea.hbm %s1132_s3, 32 }
 0x5cc   :  { %p827_p5 = scmp.ne.s32.totalorder %s1132_s3, %s826_s7  ;;  %p830_p6 = scmp.lt.u32.totalorder %s826_s7, %s1132_s3 }
 0x5ce   :  { %p832_p7 = pnand %p830_p6, %p827_p5 }
 0x5d0   :  { %835 = shalt.err (!%p832_p7)
}
 0x5d1   :  { %735 = dma.vmem_to_hbm [thread:$0]  %s733_s30, 32, %s1132_s3, [#allocation3]  }
 0x5d2   :  { %836 = dma.done.wait [#allocation3], 32  }
 0x5d3   :  { %837 = vsyncadd [#allocation3], 4294967264 }
 0x5d4   :  { %739 = vsyncpa [#allocation3], 1 }

</bundles_post_ra>
